<compile_context>
chip_gen: v7x
topology: tpu7x:2x2x1
jax: 0.10.0
libtpu: 0.0.40
codegen_flags: <defaults>
</compile_context>

<pallas_src>
import jax
import jax.numpy as jnp
from jax.experimental import pallas as pl
from jax.experimental.pallas import tpu as pltpu

EMBED_DIM = 64
NUM_HEADS = 8
HEAD_DIM = EMBED_DIM // NUM_HEADS
IN_HALF = EMBED_DIM // 2           # feature width of smiles / graph (32)
ROW_PACK = 4                       # batch rows packed per lane-row
LANES_IN = ROW_PACK * IN_HALF      # 128  (lane-dense input width)
LANES_OUT = ROW_PACK * EMBED_DIM   # 256  (lane-dense output width)


def _round_up(x, m):
    return (x + m - 1) // m * m


def _cma_kernel(smiles_ref, graph_ref, ws_ref, wg_ref, b_ref, out_ref):
    # out = smiles_packed @ Ws_blockdiag + graph_packed @ Wg_blockdiag + bias
    acc = jnp.dot(smiles_ref[...], ws_ref[...],
                  preferred_element_type=jnp.float32)
    acc = acc + jnp.dot(graph_ref[...], wg_ref[...],
                        preferred_element_type=jnp.float32)
    out_ref[...] = (acc + b_ref[...]).astype(out_ref.dtype)


def prepare_params(params, compute_dtype=jnp.float32):
    """One-time fold of value + output projections into lane-dense weights.

    Returns (ws_bd, wg_bd, b_bd):
      ws_bd, wg_bd : (128, 256) block-diagonal (4 copies of the (32, 64) fused
                     weight halves) in `compute_dtype`.
      b_bd         : (1, 256) bias tiled 4x, kept in f32 (added to f32 acc).
    """
    wq, wk, wv, bq, bk, bv, wo, bo = params
    del wq, wk, bq, bk            # dead: single kv token -> softmax == 1 exactly
    w_fused = wv @ wo             # (E, E)
    b_fused = bv @ wo + bo        # (1, E)
    eye = jnp.eye(ROW_PACK, dtype=jnp.float32)
    ws_bd = jnp.kron(eye, w_fused[:IN_HALF]).astype(compute_dtype)   # (128, 256)
    wg_bd = jnp.kron(eye, w_fused[IN_HALF:]).astype(compute_dtype)   # (128, 256)
    b_bd = jnp.tile(b_fused.reshape(1, EMBED_DIM),
                    (1, ROW_PACK)).astype(jnp.float32)               # (1, 256)
    return ws_bd, wg_bd, b_bd


def cross_modal_attention(protein, smiles, graph, prepared, *,
                          activation_dtype=None,
                          gridless_max_bytes=8 << 20,
                          max_block_rows=2048):
    """Forward pass of CrossModalAttention.

    `protein` only feeds the query projection; with a single key/value token
    softmax over the key axis is exactly 1 regardless of the query, so the
    output does not depend on it (kept for interface fidelity).
    """
    del protein                                     # dead input (weights == 1)
    ws_bd, wg_bd, b_bd = prepared
    B, half = smiles.shape
    assert half == IN_HALF and graph.shape == (B, IN_HALF)
    dtype = smiles.dtype if activation_dtype is None else activation_dtype

    # ---- pack 4 batch rows per lane-row (lane-dense loads & stores) --------
    b_pad = _round_up(B, ROW_PACK)
    s = smiles.astype(dtype)
    g = graph.astype(dtype)
    if b_pad != B:
        s = jnp.pad(s, ((0, b_pad - B), (0, 0)))
        g = jnp.pad(g, ((0, b_pad - B), (0, 0)))
    rows = b_pad // ROW_PACK
    s = s.reshape(rows, LANES_IN)
    g = g.reshape(rows, LANES_IN)

    itemsize = jnp.dtype(dtype).itemsize
    io_bytes = rows * (2 * LANES_IN + LANES_OUT) * itemsize
    w_bytes = (ws_bd.size + wg_bd.size) * jnp.dtype(ws_bd.dtype).itemsize \
        + b_bd.size * 4
    cost = pl.CostEstimate(flops=4 * rows * LANES_IN * LANES_OUT,
                           transcendentals=0,
                           bytes_accessed=io_bytes + w_bytes)

    if io_bytes <= gridless_max_bytes:
        # Small/medium batch: gridless call, all operands VMEM-resident
        # (no pipeline/step bookkeeping -- best on single-TC v5e/v6e).
        vmem = pl.BlockSpec(memory_space=pltpu.MemorySpace.VMEM)
        out_p = pl.pallas_call(
            _cma_kernel,
            out_shape=jax.ShapeDtypeStruct((rows, LANES_OUT), dtype),
            in_specs=[vmem] * 5,
            out_specs=vmem,
            cost_estimate=cost,
        )(s, g, ws_bd, wg_bd, b_bd)
    else:
        # Large batch: big batch tiles, even number of "parallel" grid steps
        # (v7x megacore), explicit padding so there is no non-divisible tail.
        num_steps = max(2, pl.cdiv(rows, max_block_rows))
        if num_steps % 2:
            num_steps += 1
        block_rows = _round_up(pl.cdiv(rows, num_steps), 8)
        rows_pad = num_steps * block_rows
        if rows_pad != rows:
            s = jnp.pad(s, ((0, rows_pad - rows), (0, 0)))
            g = jnp.pad(g, ((0, rows_pad - rows), (0, 0)))
        out_p = pl.pallas_call(
            _cma_kernel,
            out_shape=jax.ShapeDtypeStruct((rows_pad, LANES_OUT), dtype),
            grid=(num_steps,),
            in_specs=[
                pl.BlockSpec((block_rows, LANES_IN), lambda i: (i, 0)),
                pl.BlockSpec((block_rows, LANES_IN), lambda i: (i, 0)),
                pl.BlockSpec((LANES_IN, LANES_OUT), lambda i: (0, 0)),
                pl.BlockSpec((LANES_IN, LANES_OUT), lambda i: (0, 0)),
                pl.BlockSpec((1, LANES_OUT), lambda i: (0, 0)),
            ],
            out_specs=pl.BlockSpec((block_rows, LANES_OUT), lambda i: (i, 0)),
            compiler_params=pltpu.CompilerParams(
                dimension_semantics=("parallel",)),
            cost_estimate=cost,
        )(s, g, ws_bd, wg_bd, b_bd)
        out_p = out_p[:rows]

    out = out_p.reshape(rows * ROW_PACK, EMBED_DIM)
    return out[:B] if b_pad != B else out


def make_params(key):
    """Deterministic synthetic parameters matching nn.MultiheadAttention shapes."""
    k_in, k_out, k_bin, k_bout = jax.random.split(key, 4)
    # in_proj_weight: (3E, E); out_proj.weight: (E, E)  (PyTorch: y = x W^T + b)
    in_proj_weight = jax.random.normal(k_in, (3 * EMBED_DIM, EMBED_DIM), jnp.float32) * 0.05
    in_proj_bias = jax.random.normal(k_bin, (3 * EMBED_DIM,), jnp.float32) * 0.01
    out_proj_weight = jax.random.normal(k_out, (EMBED_DIM, EMBED_DIM), jnp.float32) * 0.05
    out_proj_bias = jax.random.normal(k_bout, (EMBED_DIM,), jnp.float32) * 0.01

    # Pre-transpose so downstream code computes x @ W.
    wq = in_proj_weight[:EMBED_DIM].T
    wk = in_proj_weight[EMBED_DIM:2 * EMBED_DIM].T
    wv = in_proj_weight[2 * EMBED_DIM:].T
    bq = in_proj_bias[:EMBED_DIM].reshape(1, EMBED_DIM)
    bk = in_proj_bias[EMBED_DIM:2 * EMBED_DIM].reshape(1, EMBED_DIM)
    bv = in_proj_bias[2 * EMBED_DIM:].reshape(1, EMBED_DIM)
    wo = out_proj_weight.T
    bo = out_proj_bias.reshape(1, EMBED_DIM)
    return (wq, wk, wv, bq, bk, bv, wo, bo)


def reference(protein, smiles, graph, params):
    """Pure-JAX reference of the full PyTorch forward (incl. the q/k/softmax path)."""
    wq, wk, wv, bq, bk, bv, wo, bo = params
    ligand = jnp.concatenate([smiles, graph], axis=1)
    q = protein @ wq + bq
    k = ligand @ wk + bk
    v = ligand @ wv + bv
    B = q.shape[0]
    qh = q.reshape(B, NUM_HEADS, HEAD_DIM)
    kh = k.reshape(B, NUM_HEADS, HEAD_DIM)
    vh = v.reshape(B, NUM_HEADS, HEAD_DIM)
    scores = (qh * kh).sum(-1, keepdims=True) / jnp.sqrt(float(HEAD_DIM))  # 1 key
    w = jax.nn.softmax(scores, axis=-1)                                    # == 1
    attn = (w * vh).reshape(B, EMBED_DIM)
    return attn @ wo + bo


if __name__ == "__main__":
    key = jax.random.PRNGKey(0)
    k_prot, k_smi, k_gra, k_par = jax.random.split(key, 4)
    params = make_params(k_par)
    prepared_f32 = prepare_params(params)                      # one-time weight fold

    # --- small batch: gridless path (whole arrays resident in VMEM) -------
    B = 8
    protein = jax.random.normal(k_prot, (B, EMBED_DIM), jnp.float32)
    smiles = jax.random.normal(k_smi, (B, IN_HALF), jnp.float32)
    graph = jax.random.normal(k_gra, (B, IN_HALF), jnp.float32)

    fwd = jax.jit(lambda p, s, g: cross_modal_attention(p, s, g, prepared_f32))
    out = jax.block_until_ready(fwd(protein, smiles, graph))
    ref = reference(protein, smiles, graph, params)
    assert out.shape == (B, EMBED_DIM)
    assert jnp.allclose(out, ref, rtol=1e-4, atol=1e-4), "mismatch (gridless)"

    # --- ragged batch forced onto the tiled "parallel" grid path ----------
    # (small block / zero threshold only to exercise padding + grid coverage)
    B2 = 1000
    kp2, ks2, kg2 = jax.random.split(jax.random.PRNGKey(1), 3)
    protein2 = jax.random.normal(kp2, (B2, EMBED_DIM), jnp.float32)
    smiles2 = jax.random.normal(ks2, (B2, IN_HALF), jnp.float32)
    graph2 = jax.random.normal(kg2, (B2, IN_HALF), jnp.float32)
    fwd_grid = jax.jit(lambda p, s, g: cross_modal_attention(
        p, s, g, prepared_f32, gridless_max_bytes=0, max_block_rows=64))
    out2 = jax.block_until_ready(fwd_grid(protein2, smiles2, graph2))
    ref2 = reference(protein2, smiles2, graph2, params)
    assert out2.shape == (B2, EMBED_DIM)
    assert jnp.allclose(out2, ref2, rtol=1e-4, atol=1e-4), "mismatch (grid)"

    # --- optional bf16 activations/weights (bandwidth win, ~1e-3 rel err) --
    prepared_bf16 = prepare_params(params, compute_dtype=jnp.bfloat16)
    out3 = jax.block_until_ready(cross_modal_attention(
        protein, smiles, graph, prepared_bf16, activation_dtype=jnp.bfloat16))
    assert jnp.allclose(out3.astype(jnp.float32), ref, rtol=2e-2, atol=2e-2), \
        "mismatch (bf16)"

    print("KERNEL_OK")
</pallas_src>

<mosaic_0001>
module attributes {stable_mosaic.version = 11 : i64} {
  func.func @_cma_kernel(%arg0: memref<2x128xf32, #tpu.memory_space<vmem>>, %arg1: memref<2x128xf32, #tpu.memory_space<vmem>>, %arg2: memref<128x256xf32, #tpu.memory_space<vmem>>, %arg3: memref<128x256xf32, #tpu.memory_space<vmem>>, %arg4: memref<1x256xf32, #tpu.memory_space<vmem>>, %arg5: memref<2x256xf32, #tpu.memory_space<vmem>>) attributes {dimension_semantics = [], scalar_prefetch = 0 : i64, scratch_operands = 0 : i64, tpu.core_type = #tpu.core_type<tc>} {
    %c0 = arith.constant 0 : index
    %c0_0 = arith.constant 0 : index
    %0 = vector.load %arg0[%c0, %c0_0] : memref<2x128xf32, #tpu.memory_space<vmem>>, vector<2x128xf32>
    %c0_1 = arith.constant 0 : index
    %c0_2 = arith.constant 0 : index
    %1 = vector.load %arg2[%c0_1, %c0_2] : memref<128x256xf32, #tpu.memory_space<vmem>>, vector<128x256xf32>
    %cst = arith.constant dense<0.000000e+00> : vector<2x256xf32>
    %2 = tpu.matmul %0, %1, %cst {dimension_numbers = #tpu.dot_dimension_numbers<[1], [0], [0], [1], [0, 0, 1, 1], [], []>} : vector<2x128xf32>, vector<128x256xf32>, vector<2x256xf32> -> vector<2x256xf32>
    %c0_3 = arith.constant 0 : index
    %c0_4 = arith.constant 0 : index
    %3 = vector.load %arg1[%c0_3, %c0_4] : memref<2x128xf32, #tpu.memory_space<vmem>>, vector<2x128xf32>
    %c0_5 = arith.constant 0 : index
    %c0_6 = arith.constant 0 : index
    %4 = vector.load %arg3[%c0_5, %c0_6] : memref<128x256xf32, #tpu.memory_space<vmem>>, vector<128x256xf32>
    %cst_7 = arith.constant dense<0.000000e+00> : vector<2x256xf32>
    %5 = tpu.matmul %3, %4, %cst_7 {dimension_numbers = #tpu.dot_dimension_numbers<[1], [0], [0], [1], [0, 0, 1, 1], [], []>} : vector<2x128xf32>, vector<128x256xf32>, vector<2x256xf32> -> vector<2x256xf32>
    %6 = arith.addf %2, %5 : vector<2x256xf32>
    %c0_8 = arith.constant 0 : index
    %c0_9 = arith.constant 0 : index
    %7 = vector.load %arg4[%c0_8, %c0_9] : memref<1x256xf32, #tpu.memory_space<vmem>>, vector<1x256xf32>
    %8 = vector.broadcast %7 : vector<1x256xf32> to vector<2x256xf32>
    %9 = arith.addf %6, %8 : vector<2x256xf32>
    %c0_10 = arith.constant 0 : index
    %c0_11 = arith.constant 0 : index
    %10 = vector.load %arg5[%c0_10, %c0_11] : memref<2x256xf32, #tpu.memory_space<vmem>>, vector<2x256xf32>
    tpu.vector_store %arg5[%c0_10, %c0_11], %9 {strides = array<i32>} : memref<2x256xf32, #tpu.memory_space<vmem>>, vector<2x256xf32>,
    return
  }
}

</mosaic_0001>

<bundles_post_ra>
// kernel: _lambda_.1
= control target key start
LH: loop header
LB: loop body
LE: loop exit
PB: predicated region body
PF: predicated region fallthrough
CT: control target
= control target key end

     0   :  { %10 = vsyncpa [#allocation3], 0  ;;  %s479_s0 = inlined_call_operand.vmem [shape: f32[2,128], index: 0, kind: input, shape index: {}]   ;;  %s480_s1 = inlined_call_operand.vmem [shape: f32[2,128], index: 1, kind: input, shape index: {}]   ;;  %s481_s2 = inlined_call_operand.hbm [shape: f32[128,256], index: 2, kind: input, shape index: {}]   ;;  %s482_s3 = inlined_call_operand.hbm [shape: f32[128,256], index: 3, kind: input, shape index: {}]   ;;  %s483_s4 = inlined_call_operand.vmem [shape: f32[1,256], index: 4, kind: input, shape index: {}]   ;;  %s484_s5 = inlined_call_operand.vmem [shape: f32[2,256], index: 5, kind: output, shape index: {}]  }
   0x1   :  { %11 = vsyncpa [#allocation5], 0  ;;  %s408_s18 = smov [#allocation2]   ;;  %s360_s22 = scalar_lea.hbm %s481_s2, 4096 }
   0x2   :  { %s21_s19 = sshll.u32 %s408_s18, 4  ;;  %p361_p0 = scmp.ne.s32.totalorder %s481_s2, %s360_s22  ;;  %s22_s19 = int_to_ptr.vmem [resolvable:$true] %s21_s19 }
   0x3   :  { %p364_p1 = scmp.lt.u32.totalorder %s360_s22, %s481_s2 }
   0x5   :  { %p366_p2 = pnand %p364_p1, %p361_p0 }
   0x7   :  { %369 = shalt.err (!%p366_p2)
}
   0x8   :  { %s370_s27 = scalar_lea.vmem %s22_s19, 4096  ;;  %p375_p4 = scmp.lt.s32.totalorder %s22_s19, %s22_s19 }
   0x9   :  { %p371_p3 = scmp.ne.s32.totalorder %s22_s19, %s370_s27  ;;  %p376_p5 = scmp.lt.s32.totalorder %s370_s27, %s370_s27 }
   0xb   :  { %p377_p6 = por %p376_p5, %p375_p4 }
   0xd   :  { %p378_p7 = pnand %p377_p6, %p371_p3 }
   0xf   :  { %381 = shalt.err (!%p378_p7)
}
  0x10   :  { %s409_s28 = smov 256   ;;  %s410_s29 = smov 16  }
  0x11   :  { %27 = dma.hbm_to_vmem [thread:$0]  %s481_s2, 4096, %s22_s19, [#allocation3], %s409_s28, %s409_s28, %s410_s29  }
  0x12   :  { %s411_s7 = smov [#allocation4]   ;;  %s382_s11 = scalar_lea.hbm %s482_s3, 4096 }
  0x13   :  { %s33_s8 = sshll.u32 %s411_s7, 4  ;;  %p383_p8 = scmp.ne.s32.totalorder %s482_s3, %s382_s11  ;;  %s34_s8 = int_to_ptr.vmem [resolvable:$true] %s33_s8 }
  0x14   :  { %p386_p9 = scmp.lt.u32.totalorder %s382_s11, %s482_s3 }
  0x16   :  { %p388_p10 = pnand %p386_p9, %p383_p8 }
  0x18   :  { %391 = shalt.err (!%p388_p10)
}
  0x19   :  { %s392_s16 = scalar_lea.vmem %s34_s8, 4096  ;;  %p397_p12 = scmp.lt.s32.totalorder %s34_s8, %s34_s8 }
  0x1a   :  { %p393_p11 = scmp.ne.s32.totalorder %s34_s8, %s392_s16  ;;  %p398_p13 = scmp.lt.s32.totalorder %s392_s16, %s392_s16 }
  0x1c   :  { %p399_p0 = por %p398_p13, %p397_p12 }
  0x1e   :  { %p400_p1 = pnand %p399_p0, %p393_p11 }
  0x20   :  { %403 = shalt.err (!%p400_p1)
}
  0x21   :  { %39 = dma.hbm_to_vmem [thread:$0]  %s482_s3, 4096, %s34_s8, [#allocation5], %s409_s28, %s409_s28, %s410_s29  }
  0x22   :  { %404 = dma.done.wait [#allocation3], 4096  }
  0x23   :  { %405 = vsyncadd [#allocation3], 4294963200 }
  0x24   :  { %406 = dma.done.wait [#allocation5], 4096  }
  0x25   :  { %407 = vsyncadd [#allocation5], 4294963200  ;;  %v412_v0 = vmov 0.0   ;;  %v83_v1 = vld [vmem:[#allocation4 + $0x8] sm:$0xff]  ;;  %v85_v2 = vld [vmem:[#allocation4 + $0x18] sm:$0xff] }
  0x26   :  { %178 = vmatprep.mubr.f32.mxu1 %v412_v0  ;;  %249 = vmatprep.mubr.f32.mxu0 %v412_v0  ;;  %v50_v3 = vld [vmem:[#allocation2 + $0x8] sm:$0xff]  ;;  %v289_v4 = vpack.c.bf16 %v85_v2, %v83_v1  ;;  %v52_v5 = vld [vmem:[#allocation2 + $0x18] sm:$0xff]  ;;  %v82_v6 = vld [vmem:[#allocation4] sm:$0xff] }
  0x27   :  { %v84_v7 = vld [vmem:[#allocation4 + $0x10] sm:$0xff]  ;;  %v321_v8 = vpack.c.bf16 %v52_v5, %v50_v3  ;;  %v49_v10 = vld [vmem:[#allocation2] sm:$0xff]  ;;  %v87_v12 = vld [vmem:[#allocation4 + $0x28] sm:$0xff] }
  0x28   :  { %v291_v9 = vpack.c.bf16 %v84_v7, %v82_v6  ;;  %v51_v11 = vld [vmem:[#allocation2 + $0x10] sm:$0xff]  ;;  %290 = vmatprep.subr.bf16.mxu1 %v289_v4  ;;  %v89_v14 = vld [vmem:[#allocation4 + $0x38] sm:$0xff]  ;;  %v54_v15 = vld [vmem:[#allocation2 + $0x28] sm:$0xff] }
  0x29   :  { %v323_v13 = vpack.c.bf16 %v51_v11, %v49_v10  ;;  %v56_v16 = vld [vmem:[#allocation2 + $0x38] sm:$0xff]  ;;  %322 = vmatprep.subr.bf16.mxu0 %v321_v8  ;;  %v293_v17 = vpack.c.bf16 %v89_v14, %v87_v12  ;;  %v86_v19 = vld [vmem:[#allocation4 + $0x20] sm:$0xff]  ;;  %v88_v20 = vld [vmem:[#allocation4 + $0x30] sm:$0xff] }
  0x2a   :  { %292 = vmatpush1.bf16.msra.mxu1 %v291_v9  ;;  %v325_v18 = vpack.c.bf16 %v56_v16, %v54_v15  ;;  %v53_v21 = vld [vmem:[#allocation2 + $0x20] sm:$0xff]  ;;  %v295_v22 = vpack.c.bf16 %v88_v20, %v86_v19  ;;  %v55_v23 = vld [vmem:[#allocation2 + $0x30] sm:$0xff]  ;;  %v91_v24 = vld [vmem:[#allocation4 + $0x48] sm:$0xff] }
  0x2b   :  { %324 = vmatpush1.bf16.msra.mxu0 %v323_v13  ;;  %v93_v25 = vld [vmem:[#allocation4 + $0x58] sm:$0xff]  ;;  %294 = vmatprep.subr.bf16.mxu1 %v293_v17  ;;  %v327_v26 = vpack.c.bf16 %v55_v23, %v53_v21  ;;  %v58_v28 = vld [vmem:[#allocation2 + $0x48] sm:$0xff]  ;;  %v90_v30 = vld [vmem:[#allocation4 + $0x40] sm:$0xff] }
  0x2c   :  { %326 = vmatprep.subr.bf16.mxu0 %v325_v18  ;;  %v297_v27 = vpack.c.bf16 %v93_v25, %v91_v24  ;;  %v60_v29 = vld [vmem:[#allocation2 + $0x58] sm:$0xff]  ;;  %v92_v32 = vld [vmem:[#allocation4 + $0x50] sm:$0xff]  ;;  %v57_v33 = vld [vmem:[#allocation2 + $0x40] sm:$0xff] }
  0x2d   :  { %v329_v31 = vpack.c.bf16 %v60_v29, %v58_v28  ;;  %v59_v34 = vld [vmem:[#allocation2 + $0x50] sm:$0xff]  ;;  %v299_v35 = vpack.c.bf16 %v92_v32, %v90_v30  ;;  %v95_v36 = vld [vmem:[#allocation4 + $0x68] sm:$0xff]  ;;  %v97_v37 = vld [vmem:[#allocation4 + $0x78] sm:$0xff] }
  0x2e   :  { %296 = vmatpush1.bf16.msra.mxu1 %v295_v22  ;;  %v62_v38 = vld [vmem:[#allocation2 + $0x68] sm:$0xff]  ;;  %v331_v39 = vpack.c.bf16 %v59_v34, %v57_v33  ;;  %v301_v40 = vpack.c.bf16 %v97_v37, %v95_v36  ;;  %v64_v41 = vld [vmem:[#allocation2 + $0x78] sm:$0xff]  ;;  %v94_v42 = vld [vmem:[#allocation4 + $0x60] sm:$0xff] }
  0x2f   :  { %328 = vmatpush1.bf16.msra.mxu0 %v327_v26  ;;  %298 = vmatprep.subr.bf16.mxu1 %v297_v27  ;;  %v96_v43 = vld [vmem:[#allocation4 + $0x70] sm:$0xff]  ;;  %v333_v44 = vpack.c.bf16 %v64_v41, %v62_v38  ;;  %v61_v45 = vld [vmem:[#allocation2 + $0x60] sm:$0xff]  ;;  %v99_v47 = vld [vmem:[#allocation4 + $0x88] sm:$0xff] }
  0x30   :  { %330 = vmatprep.subr.bf16.mxu0 %v329_v31  ;;  %v63_v46 = vld [vmem:[#allocation2 + $0x70] sm:$0xff]  ;;  %v101_v48 = vld [vmem:[#allocation4 + $0x98] sm:$0xff]  ;;  %v66_v49 = vld [vmem:[#allocation2 + $0x88] sm:$0xff]  ;;  %v303_v51 = vpack.c.bf16 %v96_v43, %v94_v42 }
  0x31   :  { %v68_v50 = vld [vmem:[#allocation2 + $0x98] sm:$0xff]  ;;  %v335_v52 = vpack.c.bf16 %v63_v46, %v61_v45  ;;  %v305_v53 = vpack.c.bf16 %v101_v48, %v99_v47  ;;  %v98_v54 = vld [vmem:[#allocation4 + $0x80] sm:$0xff]  ;;  %v100_v55 = vld [vmem:[#allocation4 + $0x90] sm:$0xff] }
  0x32   :  { %300 = vmatpush1.bf16.msra.mxu1 %v299_v35  ;;  %v65_v56 = vld [vmem:[#allocation2 + $0x80] sm:$0xff]  ;;  %v337_v57 = vpack.c.bf16 %v68_v50, %v66_v49  ;;  %v67_v58 = vld [vmem:[#allocation2 + $0x90] sm:$0xff]  ;;  %v103_v59 = vld [vmem:[#allocation4 + $0xa8] sm:$0xff]  ;;  %v307_v63 = vpack.c.bf16 %v100_v55, %v98_v54  ;;  %v258_v35 = vlaneseq }
  0x33   :  { %332 = vmatpush1.bf16.msra.mxu0 %v331_v39  ;;  %302 = vmatprep.subr.bf16.mxu1 %v301_v40  ;;  %v105_v60 = vld [vmem:[#allocation4 + $0xb8] sm:$0xff]  ;;  %v70_v61 = vld [vmem:[#allocation2 + $0xa8] sm:$0xff]  ;;  %v339_v0 = vpack.c.bf16 %v67_v58, %v65_v56  ;;  %v102_v2 = vld [vmem:[#allocation4 + $0xa0] sm:$0xff] }
  0x34   :  { %334 = vmatprep.subr.bf16.mxu0 %v333_v44  ;;  %v72_v62 = vld [vmem:[#allocation2 + $0xb8] sm:$0xff]  ;;  %v309_v1 = vpack.c.bf16 %v105_v60, %v103_v59  ;;  %v104_v3 = vld [vmem:[#allocation4 + $0xb0] sm:$0xff]  ;;  %v69_v4 = vld [vmem:[#allocation2 + $0xa0] sm:$0xff]  ;;  %v259_v36 = vshrl.u32 %v258_v35, 7 }
  0x35   :  { %v341_v5 = vpack.c.bf16 %v72_v62, %v70_v61  ;;  %v71_v6 = vld [vmem:[#allocation2 + $0xb0] sm:$0xff]  ;;  %v107_v7 = vld [vmem:[#allocation4 + $0xc8] sm:$0xff]  ;;  %v109_v8 = vld [vmem:[#allocation4 + $0xd8] sm:$0xff]  ;;  %v311_v11 = vpack.c.bf16 %v104_v3, %v102_v2 }
  0x36   :  { %304 = vmatpush1.bf16.msra.mxu1 %v303_v51  ;;  %v74_v9 = vld [vmem:[#allocation2 + $0xc8] sm:$0xff]  ;;  %v76_v10 = vld [vmem:[#allocation2 + $0xd8] sm:$0xff]  ;;  %v343_v12 = vpack.c.bf16 %v71_v6, %v69_v4  ;;  %v313_v13 = vpack.c.bf16 %v109_v8, %v107_v7  ;;  %v106_v14 = vld [vmem:[#allocation4 + $0xc0] sm:$0xff]  ;;  %v260_v37 = vsub.s32 0, %v259_v36  ;;  %v264_v39 = vsub.s32 1, %v259_v36 }
  0x37   :  { %336 = vmatpush1.bf16.msra.mxu0 %v335_v52  ;;  %306 = vmatprep.subr.bf16.mxu1 %v305_v53  ;;  %v108_v15 = vld [vmem:[#allocation4 + $0xd0] sm:$0xff]  ;;  %v73_v16 = vld [vmem:[#allocation2 + $0xc0] sm:$0xff]  ;;  %v345_v17 = vpack.c.bf16 %v76_v10, %v74_v9  ;;  %v111_v19 = vld [vmem:[#allocation4 + $0xe8] sm:$0xff] }
  0x38   :  { %338 = vmatprep.subr.bf16.mxu0 %v337_v57  ;;  %v75_v18 = vld [vmem:[#allocation2 + $0xd0] sm:$0xff]  ;;  %v113_v20 = vld [vmem:[#allocation4 + $0xf8] sm:$0xff]  ;;  %v78_v21 = vld [vmem:[#allocation2 + $0xe8] sm:$0xff]  ;;  %v315_v23 = vpack.c.bf16 %v108_v15, %v106_v14 }
  0x39   :  { %v80_v22 = vld [vmem:[#allocation2 + $0xf8] sm:$0xff]  ;;  %v347_v24 = vpack.c.bf16 %v75_v18, %v73_v16  ;;  %v317_v25 = vpack.c.bf16 %v113_v20, %v111_v19  ;;  %v110_v26 = vld [vmem:[#allocation4 + $0xe0] sm:$0xff]  ;;  %v112_v27 = vld [vmem:[#allocation4 + $0xf0] sm:$0xff] }
  0x3a   :  { %308 = vmatpush1.bf16.msra.mxu1 %v307_v63  ;;  %v349_v28 = vpack.c.bf16 %v80_v22, %v78_v21  ;;  %v77_v29 = vld [vmem:[#allocation2 + $0xe0] sm:$0xff]  ;;  %v79_v30 = vld [vmem:[#allocation2 + $0xf0] sm:$0xff]  ;;  %v319_v31 = vpack.c.bf16 %v112_v27, %v110_v26  ;;  %v81_v33 = vld [vmem:[%s480_s1] sm:$0x3] }
  0x3b   :  { %340 = vmatpush1.bf16.msra.mxu0 %v339_v0  ;;  %310 = vmatprep.subr.bf16.mxu1 %v309_v1  ;;  %v351_v32 = vpack.c.bf16 %v79_v30, %v77_v29  ;;  %v48_v34 = vld [vmem:[%s479_s0] sm:$0x3] }
  0x3c   :  { %342 = vmatprep.subr.bf16.mxu0 %v341_v5  ;;  %v256_v38 = vld [vmem:[%s483_s4] sm:$0x3] }
  0x3d   :  { %v261_v41 = vrot.slane %v256_v38, %v260_v37  ;;  %v265_v44 = vrot.slane %v256_v38, %v264_v39 }
  0x3e   :  { %312 = vmatpush1.bf16.msra.mxu1 %v311_v11 }
  0x3f   :  { %344 = vmatpush1.bf16.msra.mxu0 %v343_v12  ;;  %314 = vmatprep.subr.bf16.mxu1 %v313_v13 }
  0x40   :  { %346 = vmatprep.subr.bf16.mxu0 %v345_v17 }
  0x42   :  { %316 = vmatpush1.bf16.msra.mxu1 %v315_v23 }
  0x43   :  { %348 = vmatpush1.bf16.msra.mxu0 %v347_v24  ;;  %318 = vmatprep.subr.bf16.mxu1 %v317_v25 }
  0x44   :  { %350 = vmatprep.subr.bf16.mxu0 %v349_v28 }
  0x46   :  { %320 = vmatpush1.bf16.msra.mxu1 %v319_v31 }
  0x47   :  { %352 = vmatpush1.bf16.msra.mxu0 %v351_v32 }
  0x49   :  { %179 = vmatmul.mubr.f32.vlgmr.msra.gmra.mrb[0].mxu1 %v81_v33 }
  0x4a   :  { %250 = vmatmul.mubr.f32.vlgmr.msra.gmra.mrb[0].mxu0 %v48_v34 }
 0x11c   :  { %v180_v40 = vpop.f32.mrb[0].mxu1 }
 0x11d   :  { %v251_v42 = vpop.f32.mrb[0].mxu0  ;;  %v182_v43 = vpop.f32.mrb[1].mxu1 }
 0x11e   :  { %v252_v45 = vadd.f32 %v251_v42, %v180_v40  ;;  %v253_v46 = vpop.f32.mrb[1].mxu0 }
 0x11f   :  { %v254_v47 = vadd.f32 %v253_v46, %v182_v43 }
 0x120   :  { %v268_v48 = vadd.f32 %v261_v41, %v252_v45 }
 0x121   :  { %v269_v49 = vadd.f32 %v265_v44, %v254_v47 }
 0x123   :  { %v272_v50 = vcombine.low %v268_v48, %v269_v49 }
 0x125   :  { %288 = vst.sshfl [vmem:[%s484_s5] sm:$0x33 pattern:$0x76325410] %v272_v50 }
 0x126   :  { %286 = vsyncpa [#allocation3], 1 }
 0x127   :  { %287 = vsyncpa [#allocation5], 1 }

</bundles_post_ra>
